<compile_context>
chip_gen: v6e
topology: v6e:2x2x1
jax: 0.10.0
libtpu: 0.0.40
codegen_flags: <defaults>
</compile_context>

<pallas_src>
import functools
import numpy as np
import jax
import jax.numpy as jnp
from jax.experimental import pallas as pl
from jax.experimental.pallas import tpu as pltpu


# ---------------------------------------------------------------------------
# Deterministic "parameters": hemisphere sample directions (module __init__)
# ---------------------------------------------------------------------------
def generate_hemisphere(r=1.0, samples=(5j, 5j)):
    u, v = np.mgrid[0:np.pi:samples[0], 0:np.pi:samples[1]]
    x = (r * np.cos(u) * np.sin(v)).flatten()
    y = (r * np.sin(u) * np.sin(v)).flatten()
    z = (r * np.cos(v)).flatten()
    return jnp.asarray(np.c_[x, y, z], dtype=jnp.float32)          # (S=25, 3)


def _round_up(x, m):
    return ((x + m - 1) // m) * m


# ---------------------------------------------------------------------------
# Glue (plain JAX): hemisphere projection, emitted directly in (3, S, N) layout
# ---------------------------------------------------------------------------
def project_hemisphere_rays(p, l, hemi_vecs):
    """Ray directions d[:, s, n] = (R_n @ hemi_s + l) - p_n, layout (3, S, N)."""
    n = p.shape[0]
    u = l[None, :] - p                                              # (N,3)
    u_norm = jnp.linalg.norm(u, axis=1)
    u_hat = u / u_norm[:, None]
    # p_local = (0, |u|, 0);  v = -p_local / |p_local| = (0,-1,0)
    v_hat = jnp.tile(jnp.array([0.0, -1.0, 0.0], jnp.float32)[None, :], (n, 1))
    c = jnp.sum(v_hat * u_hat, axis=1)                              # (N,)
    w = jnp.cross(v_hat, u_hat)                                     # (N,3)
    z = jnp.zeros_like(c)
    vmat = jnp.stack([
        jnp.stack([z, -w[:, 2], w[:, 1]], axis=1),
        jnp.stack([w[:, 2], z, -w[:, 0]], axis=1),
        jnp.stack([-w[:, 1], w[:, 0], z], axis=1),
    ], axis=1)                                                      # (N,3,3)
    eye = jnp.eye(3, dtype=jnp.float32)[None]
    R = eye + vmat + jnp.matmul(vmat, vmat) / (1.0 + c)[:, None, None]
    lh = jnp.einsum('nij,sj->isn', R, hemi_vecs) + l[:, None, None]  # (3,S,N)
    return lh - jnp.transpose(p)[:, None, :]                         # (3,S,N)


# ---------------------------------------------------------------------------
# Glue: scalar condition of the module-level get_point_light_surface_intersections.
# Everything is flattened there, so it only ever inspects V[0,:3,:] and r[0,0,0,:]
# and can only ever clear mask.flat[0].
# ---------------------------------------------------------------------------
def _flat0_condition(V, r000):
    a0, a1, a2 = V[0, 0, 0], V[0, 0, 1], V[0, 0, 2]
    b0, b1, b2 = V[0, 1, 0], V[0, 1, 1], V[0, 1, 2]
    c0, c1, c2 = V[0, 2, 0], V[0, 2, 1], V[0, 2, 2]
    r0, r1, r2 = r000[0], r000[1], r000[2]
    A = a0 * r2 - a2 * r0
    B = a0 * b2 - a2 * b0
    C = a0 * r1 - a1 * r0
    D = a0 * b1 - a1 * b0
    E = a0 * c2 - a2 * c0
    F = (a0 * b2 - a2 * b0) * (a1 * c0 - a0 * c1)
    G = a0 * b1 - a1 * b0
    gam = G * (A * D - B * C) / (D * (E * G + F))
    beta = (a0 * r1 - a1 * r0 + gam * a1 * c0 - gam * a0 * c1) / (a0 * b1 - a1 * b0)
    alpha = (r0 - (beta * b0 + gam * c0)) / a0
    return (beta > 0.0) & (gam > 0.0) & (alpha > 0.0)               # scalar bool


# ---------------------------------------------------------------------------
# Pallas kernel: per-surface viability (unrolled), sun-mask, colour composition
# ---------------------------------------------------------------------------
def _glass_kernel(d_ref, p_ref, vk_ref, own_ref, pk_ref, out_ref, *, num_surfaces):
    # d_ref:   (3, S, TN) ray directions (xyz leading, hemisphere S on sublanes)
    # p_ref:   (3, TN)    ray origins (== points)
    # vk_ref:  (4*M,)     SMEM plane table [nx, ny, nz, k] per surface
    # own_ref: (1, TN)    int32 bit-mask, bit m set iff the point lies on surface m
    # pk_ref:  (5, TN)    rows: col r, g, b | costheta | glass flag
    dx = d_ref[0]                                          # (S, TN)
    dy = d_ref[1]
    dz = d_ref[2]
    px = p_ref[0:1, :]                                     # (1, TN)
    py = p_ref[1:2, :]
    pz = p_ref[2:3, :]
    own_bits = own_ref[...]                                # (1, TN) int32

    hit = None                                             # (S, TN) bool, OR over M
    for m in range(num_surfaces):                          # M tiny -> fully unrolled
        nx = vk_ref[4 * m + 0]                             # scalars from SMEM
        ny = vk_ref[4 * m + 1]
        nz = vk_ref[4 * m + 2]
        kk = vk_ref[4 * m + 3]
        num = -(kk + nx * px + ny * py + nz * pz)          # (1, TN)   num = t * (v.d)
        own_m = (own_bits & (1 << m)) != 0                 # (1, TN)
        num = jnp.where(own_m, 0.0, num)                   # own surface -> never viable
        vd = nx * dx + ny * dy + nz * dz                   # (S, TN)
        # t = num/vd in (0,1)  <=>  num*vd > 0  and  (vd-num)*vd > 0  (no divide)
        ok = jnp.minimum(num * vd, (vd - num) * vd) > 0.0  # (S, TN) bool
        hit = ok if hit is None else (hit | ok)

    # count hemisphere samples with >=1 viable surface; 25.0 hard-coded in module
    hits = jnp.sum(hit.astype(jnp.float32), axis=0, keepdims=True)   # (1, TN)
    sun = jnp.clip(hits * (1.0 / 25.0), 0.0, 1.0)                    # (1, TN)

    col = pk_ref[0:3, :]                                   # (3, TN)
    costheta = pk_ref[3:4, :]                              # (1, TN)
    glass = pk_ref[4:5, :]                                 # (1, TN)
    add = jnp.where(glass > 0.5, 30.0 * costheta * (-sun), 0.0)
    out_ref[...] = jnp.clip(col + add, 0.0, 1.0)           # (3, TN)


# ---------------------------------------------------------------------------
# Wrapper = GlassShader.forward
# ---------------------------------------------------------------------------
def glass_shader_forward(V, indices, pointindex, COL, OPA, p, l, normals, it=0,
                         hemi_vecs=None, tile_n=None):
    if hemi_vecs is None:
        hemi_vecs = generate_hemisphere()
    N, M, S = p.shape[0], V.shape[0], hemi_vecs.shape[0]
    assert M <= 30, "own-surface bit-mask packs surface indices into int32"

    p32 = p.astype(jnp.float32)
    l32 = l.astype(jnp.float32)
    V32 = V.astype(jnp.float32)

    # glue: hemisphere rays, directly in lane-major (3, S, N) layout
    d_sn = project_hemisphere_rays(p32, l32, hemi_vecs)              # (3,S,N)
    p_t = jnp.transpose(p32)                                         # (3,N)

    # glue: surface planes, packed [normal | offset] -> flat SMEM table
    vsurf = jnp.cross(V32[:, 1] - V32[:, 0], V32[:, 2] - V32[:, 0])
    vsurf = vsurf / jnp.linalg.norm(vsurf, axis=1, keepdims=True)    # (M,3)
    k = -jnp.sum(vsurf * V32[:, 3], axis=1)                          # (M,)
    vk_flat = jnp.concatenate([vsurf, k[:, None]], axis=1).reshape(-1)   # (4M,)

    # glue: index gathers and own-surface bit-mask
    pi = pointindex.reshape(-1).astype(jnp.int32)                    # squeeze(0).long()
    local = pi % pi.shape[0]
    si = indices[pi, 0]
    ki = indices[pi, 1]
    own_bool = jnp.zeros((M, N), jnp.int32).at[si, local].set(1)     # (M,N) 0/1
    bits = jnp.left_shift(jnp.int32(1), jnp.arange(M, dtype=jnp.int32))
    own_bits = jnp.sum(own_bool * bits[:, None], axis=0).astype(jnp.int32)[None, :]  # (1,N)

    col_t = jnp.transpose(COL[si, ki].astype(jnp.float32))           # (3,N)
    opa = OPA[si, ki].astype(jnp.float32)                            # (N,)
    nrm = normals[si].astype(jnp.float32)                            # (N,3)
    refl = l32[None, :] - p32
    # TODO(synk): `normalise_normals` is undefined in the source; assumed row-wise L2 normalisation.
    pn = refl / jnp.linalg.norm(refl, axis=1, keepdims=True)
    costheta = jnp.sum(nrm * pn, axis=1) / jnp.pi                    # (N,)
    glass = (jnp.clip(opa, 0.0, 1.0) < 0.999).astype(jnp.float32)    # (N,)
    pk = jnp.concatenate([col_t, costheta[None, :], glass[None, :]], axis=0)   # (5,N)

    # tile / pad the point (lane) axis; keep >=2 parallel grid steps when possible
    lane = 128
    n128 = _round_up(max(N, 1), lane)
    if tile_n is not None:
        tn = max(lane, min(_round_up(int(tile_n), lane), n128))
    else:
        want = 512
        if n128 >= 2 * lane:                      # v7x: 2 TensorCores per chip
            want = min(want, (n128 // 2) // lane * lane)
        tn = max(lane, min(want, n128))
    n_pad = _round_up(N, tn)

    def padn(a):
        return jnp.pad(a, [(0, 0)] * (a.ndim - 1) + [(0, n_pad - N)])

    kernel = functools.partial(_glass_kernel, num_surfaces=M)
    out = pl.pallas_call(
        kernel,
        out_shape=jax.ShapeDtypeStruct((3, n_pad), jnp.float32),
        grid=(n_pad // tn,),
        in_specs=[
            pl.BlockSpec((3, S, tn), lambda i: (0, 0, i)),            # ray directions d
            pl.BlockSpec((3, tn), lambda i: (0, i)),                  # ray origins p
            pl.BlockSpec(memory_space=pltpu.MemorySpace.SMEM),        # plane table [v|k]
            pl.BlockSpec((1, tn), lambda i: (0, i)),                  # own-surface bit-mask
            pl.BlockSpec((5, tn), lambda i: (0, i)),                  # packed epilogue
        ],
        out_specs=pl.BlockSpec((3, tn), lambda i: (0, i)),
        compiler_params=pltpu.CompilerParams(
            dimension_semantics=("parallel",),
            vmem_limit_bytes=32 * 1024 * 1024),
    )(padn(d_sn), padn(p_t), vk_flat, padn(own_bits), padn(pk))

    result = jnp.transpose(out[:, :N])                                # (N,3)

    # glue: exact point-0 path including the module-level flat-index-0 fix-up
    # (it can only ever clear mask.flat[0] = (point 0, surface 0, sample 0)).
    p0 = p32[0]
    d0 = d_sn[:, :, 0]                                                # (3,S)
    d000 = d_sn[:, 0, 0]                                              # (3,)
    num0 = -(k + vsurf @ p0)                                          # (M,)
    vd0 = vsurf @ d0                                                  # (M,S)
    own0 = own_bool[:, 0].astype(bool)                                # (M,)
    viable0 = ((num0[:, None] * vd0 > 0.0)
               & ((num0[:, None] - vd0) * vd0 < 0.0)
               & (~own0)[:, None])                                    # (M,S)
    t000 = -(k[0] + jnp.dot(vsurf[0], p0)) / jnp.dot(vsurf[0], d000)
    r000 = p0 + t000 * d000
    cond = _flat0_condition(V32, r000)
    viable0 = viable0.at[0, 0].set(viable0[0, 0] & cond)
    sun0 = jnp.clip(jnp.sum(jnp.any(viable0, axis=0).astype(jnp.float32)) / 25.0,
                    0.0, 1.0)
    add0 = jnp.where(glass[0] > 0.5, 30.0 * costheta[0] * (-sun0), 0.0)
    out0 = jnp.clip(col_t[:, 0] + add0, 0.0, 1.0)                     # (3,)
    return result.at[0].set(out0)


# ---------------------------------------------------------------------------
# Pure-JAX reference (same math, no Pallas) for a sanity check
# ---------------------------------------------------------------------------
def glass_shader_reference(V, indices, pointindex, COL, OPA, p, l, normals, hemi_vecs):
    N, M, S = p.shape[0], V.shape[0], hemi_vecs.shape[0]
    p32 = p.astype(jnp.float32)
    l32 = l.astype(jnp.float32)
    d = jnp.transpose(project_hemisphere_rays(p32, l32, hemi_vecs), (2, 1, 0))  # (N,S,3)
    o = jnp.broadcast_to(p32[:, None, :], (N, S, 3))
    vs = jnp.cross(V[:, 1] - V[:, 0], V[:, 2] - V[:, 0])
    vs = vs / jnp.linalg.norm(vs, axis=1, keepdims=True)
    k = -jnp.sum(vs * V[:, 3], axis=1)
    vo = jnp.einsum('mc,nsc->nms', vs, o)
    vd = jnp.einsum('mc,nsc->nms', vs, d)
    t = -(k[None, :, None] + vo) / vd
    pi = pointindex.reshape(-1).astype(jnp.int32)
    local = pi % pi.shape[0]
    si, ki = indices[pi, 0], indices[pi, 1]
    own = jnp.zeros((N, M), bool).at[local, si].set(True)
    viable = (t > 0.0) & (t < 1.0) & (~own[:, :, None])
    r000 = o[0, 0] + t[0, 0, 0] * d[0, 0]
    cond = _flat0_condition(V, r000)
    viable = viable.at[0, 0, 0].set(viable[0, 0, 0] & cond)
    sun = jnp.clip(jnp.sum(jnp.sum(viable, axis=1) > 0, axis=1)[:, None] / 25.0, 0.0, 1.0)
    col = COL[si, ki]
    opa = OPA[si, ki]
    nrm = normals[si]
    refl = l32[None, :] - p32
    pnrm = refl / jnp.linalg.norm(refl, axis=1, keepdims=True)
    cost = jnp.sum(nrm * pnrm, axis=1, keepdims=True) / jnp.pi
    glass = (jnp.clip(opa, 0.0, 1.0) < 0.999)[:, None]
    add = jnp.where(glass, 30.0 * cost * (-sun), 0.0)
    return jnp.clip(add + col, 0.0, 1.0)


if __name__ == "__main__":
    key = jax.random.PRNGKey(0)
    N, M, K_PER, P = 200, 5, 6, 16     # points, surfaces, colours-per-surface, index rows
    ks = jax.random.split(key, 8)
    V = jax.random.normal(ks[0], (M, 4, 3), jnp.float32) * 2.0
    indices = jnp.stack([jax.random.randint(ks[1], (P,), 0, M),
                         jax.random.randint(ks[2], (P,), 0, K_PER)], axis=1)
    pointindex = jax.random.randint(ks[3], (1, N), 0, P)
    COL = jax.random.uniform(ks[4], (M, K_PER, 3), dtype=jnp.float32)
    OPA = jax.random.uniform(ks[5], (M, K_PER), dtype=jnp.float32)
    p = jax.random.normal(ks[6], (N, 3), jnp.float32)
    l = jnp.array([2.0, 5.0, 3.0], jnp.float32)
    normals = jax.random.normal(ks[7], (M, 3), jnp.float32)
    normals = normals / jnp.linalg.norm(normals, axis=1, keepdims=True)

    hemi = generate_hemisphere()
    # default tile heuristic -> tn=128, n_pad=256, grid=(2,) parallel steps
    out = glass_shader_forward(V, indices, pointindex, COL, OPA, p, l, normals, it=0,
                               hemi_vecs=hemi)
    out = jax.block_until_ready(out)
    ref = glass_shader_reference(V, indices, pointindex, COL, OPA, p, l, normals, hemi)
    assert out.shape == (N, 3) and out.dtype == jnp.float32
    err = float(jnp.max(jnp.abs(out - ref)))
    assert err < 1e-4, f"max abs err {err}"
    print("KERNEL_OK")
</pallas_src>

<mosaic_0001>
module attributes {stable_mosaic.version = 11 : i64} {
  func.func @_glass_kernel(%arg0: i32, %arg1: memref<3x25x128xf32, #tpu.memory_space<vmem>>, %arg2: memref<3x128xf32, #tpu.memory_space<vmem>>, %arg3: memref<20xf32, #tpu.memory_space<smem>>, %arg4: memref<1x128xi32, #tpu.memory_space<vmem>>, %arg5: memref<5x128xf32, #tpu.memory_space<vmem>>, %arg6: memref<3x128xf32, #tpu.memory_space<vmem>>) attributes {dimension_semantics = [#tpu.dimension_semantics<parallel>], iteration_bounds = array<i64: 2>, scalar_prefetch = 0 : i64, scratch_operands = 0 : i64, tpu.core_type = #tpu.core_type<tc>, window_params = [{transform_indices = @transform_0, window_bounds = array<i64: 3, 25, 128>}, {transform_indices = @transform_1, window_bounds = array<i64: 3, 128>}, {transform_indices = @transform_2, window_bounds = array<i64: 20>}, {transform_indices = @transform_3, window_bounds = array<i64: 1, 128>}, {transform_indices = @transform_4, window_bounds = array<i64: 5, 128>}, {transform_indices = @transform_5, window_bounds = array<i64: 3, 128>}]} {
    %c0 = arith.constant 0 : index
    %c0_0 = arith.constant 0 : index
    %c0_1 = arith.constant 0 : index
    %0 = vector.load %arg1[%c0, %c0_0, %c0_1] : memref<3x25x128xf32, #tpu.memory_space<vmem>>, vector<1x25x128xf32>
    %1 = vector.shape_cast %0 : vector<1x25x128xf32> to vector<25x128xf32>
    %c1 = arith.constant 1 : index
    %c0_2 = arith.constant 0 : index
    %c0_3 = arith.constant 0 : index
    %2 = vector.load %arg1[%c1, %c0_2, %c0_3] : memref<3x25x128xf32, #tpu.memory_space<vmem>>, vector<1x25x128xf32>
    %3 = vector.shape_cast %2 : vector<1x25x128xf32> to vector<25x128xf32>
    %c2 = arith.constant 2 : index
    %c0_4 = arith.constant 0 : index
    %c0_5 = arith.constant 0 : index
    %4 = vector.load %arg1[%c2, %c0_4, %c0_5] : memref<3x25x128xf32, #tpu.memory_space<vmem>>, vector<1x25x128xf32>
    %5 = vector.shape_cast %4 : vector<1x25x128xf32> to vector<25x128xf32>
    %c0_6 = arith.constant 0 : index
    %c0_7 = arith.constant 0 : index
    %6 = vector.load %arg2[%c0_6, %c0_7] : memref<3x128xf32, #tpu.memory_space<vmem>>, vector<1x128xf32>
    %c1_8 = arith.constant 1 : index
    %c0_9 = arith.constant 0 : index
    %7 = vector.load %arg2[%c1_8, %c0_9] : memref<3x128xf32, #tpu.memory_space<vmem>>, vector<1x128xf32>
    %c2_10 = arith.constant 2 : index
    %c0_11 = arith.constant 0 : index
    %8 = vector.load %arg2[%c2_10, %c0_11] : memref<3x128xf32, #tpu.memory_space<vmem>>, vector<1x128xf32>
    %c0_12 = arith.constant 0 : index
    %c0_13 = arith.constant 0 : index
    %9 = vector.load %arg4[%c0_12, %c0_13] : memref<1x128xi32, #tpu.memory_space<vmem>>, vector<1x128xi32>
    %c0_14 = arith.constant 0 : index
    %10 = memref.load %arg3[%c0_14] : memref<20xf32, #tpu.memory_space<smem>>
    %c1_15 = arith.constant 1 : index
    %11 = memref.load %arg3[%c1_15] : memref<20xf32, #tpu.memory_space<smem>>
    %c2_16 = arith.constant 2 : index
    %12 = memref.load %arg3[%c2_16] : memref<20xf32, #tpu.memory_space<smem>>
    %c3 = arith.constant 3 : index
    %13 = memref.load %arg3[%c3] : memref<20xf32, #tpu.memory_space<smem>>
    %14 = vector.broadcast %10 : f32 to vector<1x128xf32>
    %15 = arith.mulf %14, %6 : vector<1x128xf32>
    %16 = vector.broadcast %13 : f32 to vector<1x128xf32>
    %17 = arith.addf %16, %15 : vector<1x128xf32>
    %18 = vector.broadcast %11 : f32 to vector<1x128xf32>
    %19 = arith.mulf %18, %7 : vector<1x128xf32>
    %20 = arith.addf %17, %19 : vector<1x128xf32>
    %21 = vector.broadcast %12 : f32 to vector<1x128xf32>
    %22 = arith.mulf %21, %8 : vector<1x128xf32>
    %23 = arith.addf %20, %22 : vector<1x128xf32>
    %cst = arith.constant 0.000000e+00 : f32
    %24 = vector.broadcast %cst : f32 to vector<1x128xf32>
    %25 = arith.subf %24, %23 : vector<1x128xf32>
    %c1_i32 = arith.constant 1 : i32
    %26 = vector.broadcast %c1_i32 : i32 to vector<1x128xi32>
    %27 = arith.andi %9, %26 : vector<1x128xi32>
    %c0_i32 = arith.constant 0 : i32
    %28 = vector.broadcast %c0_i32 : i32 to vector<1x128xi32>
    %29 = arith.cmpi ne, %27, %28 : vector<1x128xi32>
    %cst_17 = arith.constant 0.000000e+00 : f32
    %30 = vector.broadcast %cst_17 : f32 to vector<1x128xf32>
    %31 = arith.select %29, %30, %25 : vector<1x128xi1>, vector<1x128xf32>
    %32 = vector.broadcast %10 : f32 to vector<25x128xf32>
    %33 = arith.mulf %32, %1 : vector<25x128xf32>
    %34 = vector.broadcast %11 : f32 to vector<25x128xf32>
    %35 = arith.mulf %34, %3 : vector<25x128xf32>
    %36 = arith.addf %33, %35 : vector<25x128xf32>
    %37 = vector.broadcast %12 : f32 to vector<25x128xf32>
    %38 = arith.mulf %37, %5 : vector<25x128xf32>
    %39 = arith.addf %36, %38 : vector<25x128xf32>
    %40 = vector.broadcast %31 : vector<1x128xf32> to vector<25x128xf32>
    %41 = arith.mulf %40, %39 : vector<25x128xf32>
    %42 = vector.broadcast %31 : vector<1x128xf32> to vector<25x128xf32>
    %43 = arith.subf %39, %42 : vector<25x128xf32>
    %44 = arith.mulf %43, %39 : vector<25x128xf32>
    %45 = arith.minimumf %41, %44 : vector<25x128xf32>
    %cst_18 = arith.constant 0.000000e+00 : f32
    %46 = vector.broadcast %cst_18 : f32 to vector<25x128xf32>
    %47 = arith.cmpf ogt, %45, %46 : vector<25x128xf32>
    %c4 = arith.constant 4 : index
    %48 = memref.load %arg3[%c4] : memref<20xf32, #tpu.memory_space<smem>>
    %c5 = arith.constant 5 : index
    %49 = memref.load %arg3[%c5] : memref<20xf32, #tpu.memory_space<smem>>
    %c6 = arith.constant 6 : index
    %50 = memref.load %arg3[%c6] : memref<20xf32, #tpu.memory_space<smem>>
    %c7 = arith.constant 7 : index
    %51 = memref.load %arg3[%c7] : memref<20xf32, #tpu.memory_space<smem>>
    %52 = vector.broadcast %48 : f32 to vector<1x128xf32>
    %53 = arith.mulf %52, %6 : vector<1x128xf32>
    %54 = vector.broadcast %51 : f32 to vector<1x128xf32>
    %55 = arith.addf %54, %53 : vector<1x128xf32>
    %56 = vector.broadcast %49 : f32 to vector<1x128xf32>
    %57 = arith.mulf %56, %7 : vector<1x128xf32>
    %58 = arith.addf %55, %57 : vector<1x128xf32>
    %59 = vector.broadcast %50 : f32 to vector<1x128xf32>
    %60 = arith.mulf %59, %8 : vector<1x128xf32>
    %61 = arith.addf %58, %60 : vector<1x128xf32>
    %cst_19 = arith.constant 0.000000e+00 : f32
    %62 = vector.broadcast %cst_19 : f32 to vector<1x128xf32>
    %63 = arith.subf %62, %61 : vector<1x128xf32>
    %c2_i32 = arith.constant 2 : i32
    %64 = vector.broadcast %c2_i32 : i32 to vector<1x128xi32>
    %65 = arith.andi %9, %64 : vector<1x128xi32>
    %c0_i32_20 = arith.constant 0 : i32
    %66 = vector.broadcast %c0_i32_20 : i32 to vector<1x128xi32>
    %67 = arith.cmpi ne, %65, %66 : vector<1x128xi32>
    %cst_21 = arith.constant 0.000000e+00 : f32
    %68 = vector.broadcast %cst_21 : f32 to vector<1x128xf32>
    %69 = arith.select %67, %68, %63 : vector<1x128xi1>, vector<1x128xf32>
    %70 = vector.broadcast %48 : f32 to vector<25x128xf32>
    %71 = arith.mulf %70, %1 : vector<25x128xf32>
    %72 = vector.broadcast %49 : f32 to vector<25x128xf32>
    %73 = arith.mulf %72, %3 : vector<25x128xf32>
    %74 = arith.addf %71, %73 : vector<25x128xf32>
    %75 = vector.broadcast %50 : f32 to vector<25x128xf32>
    %76 = arith.mulf %75, %5 : vector<25x128xf32>
    %77 = arith.addf %74, %76 : vector<25x128xf32>
    %78 = vector.broadcast %69 : vector<1x128xf32> to vector<25x128xf32>
    %79 = arith.mulf %78, %77 : vector<25x128xf32>
    %80 = vector.broadcast %69 : vector<1x128xf32> to vector<25x128xf32>
    %81 = arith.subf %77, %80 : vector<25x128xf32>
    %82 = arith.mulf %81, %77 : vector<25x128xf32>
    %83 = arith.minimumf %79, %82 : vector<25x128xf32>
    %cst_22 = arith.constant 0.000000e+00 : f32
    %84 = vector.broadcast %cst_22 : f32 to vector<25x128xf32>
    %85 = arith.cmpf ogt, %83, %84 : vector<25x128xf32>
    %86 = arith.ori %47, %85 : vector<25x128xi1>
    %c8 = arith.constant 8 : index
    %87 = memref.load %arg3[%c8] : memref<20xf32, #tpu.memory_space<smem>>
    %c9 = arith.constant 9 : index
    %88 = memref.load %arg3[%c9] : memref<20xf32, #tpu.memory_space<smem>>
    %c10 = arith.constant 10 : index
    %89 = memref.load %arg3[%c10] : memref<20xf32, #tpu.memory_space<smem>>
    %c11 = arith.constant 11 : index
    %90 = memref.load %arg3[%c11] : memref<20xf32, #tpu.memory_space<smem>>
    %91 = vector.broadcast %87 : f32 to vector<1x128xf32>
    %92 = arith.mulf %91, %6 : vector<1x128xf32>
    %93 = vector.broadcast %90 : f32 to vector<1x128xf32>
    %94 = arith.addf %93, %92 : vector<1x128xf32>
    %95 = vector.broadcast %88 : f32 to vector<1x128xf32>
    %96 = arith.mulf %95, %7 : vector<1x128xf32>
    %97 = arith.addf %94, %96 : vector<1x128xf32>
    %98 = vector.broadcast %89 : f32 to vector<1x128xf32>
    %99 = arith.mulf %98, %8 : vector<1x128xf32>
    %100 = arith.addf %97, %99 : vector<1x128xf32>
    %cst_23 = arith.constant 0.000000e+00 : f32
    %101 = vector.broadcast %cst_23 : f32 to vector<1x128xf32>
    %102 = arith.subf %101, %100 : vector<1x128xf32>
    %c4_i32 = arith.constant 4 : i32
    %103 = vector.broadcast %c4_i32 : i32 to vector<1x128xi32>
    %104 = arith.andi %9, %103 : vector<1x128xi32>
    %c0_i32_24 = arith.constant 0 : i32
    %105 = vector.broadcast %c0_i32_24 : i32 to vector<1x128xi32>
    %106 = arith.cmpi ne, %104, %105 : vector<1x128xi32>
    %cst_25 = arith.constant 0.000000e+00 : f32
    %107 = vector.broadcast %cst_25 : f32 to vector<1x128xf32>
    %108 = arith.select %106, %107, %102 : vector<1x128xi1>, vector<1x128xf32>
    %109 = vector.broadcast %87 : f32 to vector<25x128xf32>
    %110 = arith.mulf %109, %1 : vector<25x128xf32>
    %111 = vector.broadcast %88 : f32 to vector<25x128xf32>
    %112 = arith.mulf %111, %3 : vector<25x128xf32>
    %113 = arith.addf %110, %112 : vector<25x128xf32>
    %114 = vector.broadcast %89 : f32 to vector<25x128xf32>
    %115 = arith.mulf %114, %5 : vector<25x128xf32>
    %116 = arith.addf %113, %115 : vector<25x128xf32>
    %117 = vector.broadcast %108 : vector<1x128xf32> to vector<25x128xf32>
    %118 = arith.mulf %117, %116 : vector<25x128xf32>
    %119 = vector.broadcast %108 : vector<1x128xf32> to vector<25x128xf32>
    %120 = arith.subf %116, %119 : vector<25x128xf32>
    %121 = arith.mulf %120, %116 : vector<25x128xf32>
    %122 = arith.minimumf %118, %121 : vector<25x128xf32>
    %cst_26 = arith.constant 0.000000e+00 : f32
    %123 = vector.broadcast %cst_26 : f32 to vector<25x128xf32>
    %124 = arith.cmpf ogt, %122, %123 : vector<25x128xf32>
    %125 = arith.ori %86, %124 : vector<25x128xi1>
    %c12 = arith.constant 12 : index
    %126 = memref.load %arg3[%c12] : memref<20xf32, #tpu.memory_space<smem>>
    %c13 = arith.constant 13 : index
    %127 = memref.load %arg3[%c13] : memref<20xf32, #tpu.memory_space<smem>>
    %c14 = arith.constant 14 : index
    %128 = memref.load %arg3[%c14] : memref<20xf32, #tpu.memory_space<smem>>
    %c15 = arith.constant 15 : index
    %129 = memref.load %arg3[%c15] : memref<20xf32, #tpu.memory_space<smem>>
    %130 = vector.broadcast %126 : f32 to vector<1x128xf32>
    %131 = arith.mulf %130, %6 : vector<1x128xf32>
    %132 = vector.broadcast %129 : f32 to vector<1x128xf32>
    %133 = arith.addf %132, %131 : vector<1x128xf32>
    %134 = vector.broadcast %127 : f32 to vector<1x128xf32>
    %135 = arith.mulf %134, %7 : vector<1x128xf32>
    %136 = arith.addf %133, %135 : vector<1x128xf32>
    %137 = vector.broadcast %128 : f32 to vector<1x128xf32>
    %138 = arith.mulf %137, %8 : vector<1x128xf32>
    %139 = arith.addf %136, %138 : vector<1x128xf32>
    %cst_27 = arith.constant 0.000000e+00 : f32
    %140 = vector.broadcast %cst_27 : f32 to vector<1x128xf32>
    %141 = arith.subf %140, %139 : vector<1x128xf32>
    %c8_i32 = arith.constant 8 : i32
    %142 = vector.broadcast %c8_i32 : i32 to vector<1x128xi32>
    %143 = arith.andi %9, %142 : vector<1x128xi32>
    %c0_i32_28 = arith.constant 0 : i32
    %144 = vector.broadcast %c0_i32_28 : i32 to vector<1x128xi32>
    %145 = arith.cmpi ne, %143, %144 : vector<1x128xi32>
    %cst_29 = arith.constant 0.000000e+00 : f32
    %146 = vector.broadcast %cst_29 : f32 to vector<1x128xf32>
    %147 = arith.select %145, %146, %141 : vector<1x128xi1>, vector<1x128xf32>
    %148 = vector.broadcast %126 : f32 to vector<25x128xf32>
    %149 = arith.mulf %148, %1 : vector<25x128xf32>
    %150 = vector.broadcast %127 : f32 to vector<25x128xf32>
    %151 = arith.mulf %150, %3 : vector<25x128xf32>
    %152 = arith.addf %149, %151 : vector<25x128xf32>
    %153 = vector.broadcast %128 : f32 to vector<25x128xf32>
    %154 = arith.mulf %153, %5 : vector<25x128xf32>
    %155 = arith.addf %152, %154 : vector<25x128xf32>
    %156 = vector.broadcast %147 : vector<1x128xf32> to vector<25x128xf32>
    %157 = arith.mulf %156, %155 : vector<25x128xf32>
    %158 = vector.broadcast %147 : vector<1x128xf32> to vector<25x128xf32>
    %159 = arith.subf %155, %158 : vector<25x128xf32>
    %160 = arith.mulf %159, %155 : vector<25x128xf32>
    %161 = arith.minimumf %157, %160 : vector<25x128xf32>
    %cst_30 = arith.constant 0.000000e+00 : f32
    %162 = vector.broadcast %cst_30 : f32 to vector<25x128xf32>
    %163 = arith.cmpf ogt, %161, %162 : vector<25x128xf32>
    %164 = arith.ori %125, %163 : vector<25x128xi1>
    %c16 = arith.constant 16 : index
    %165 = memref.load %arg3[%c16] : memref<20xf32, #tpu.memory_space<smem>>
    %c17 = arith.constant 17 : index
    %166 = memref.load %arg3[%c17] : memref<20xf32, #tpu.memory_space<smem>>
    %c18 = arith.constant 18 : index
    %167 = memref.load %arg3[%c18] : memref<20xf32, #tpu.memory_space<smem>>
    %c19 = arith.constant 19 : index
    %168 = memref.load %arg3[%c19] : memref<20xf32, #tpu.memory_space<smem>>
    %169 = vector.broadcast %165 : f32 to vector<1x128xf32>
    %170 = arith.mulf %169, %6 : vector<1x128xf32>
    %171 = vector.broadcast %168 : f32 to vector<1x128xf32>
    %172 = arith.addf %171, %170 : vector<1x128xf32>
    %173 = vector.broadcast %166 : f32 to vector<1x128xf32>
    %174 = arith.mulf %173, %7 : vector<1x128xf32>
    %175 = arith.addf %172, %174 : vector<1x128xf32>
    %176 = vector.broadcast %167 : f32 to vector<1x128xf32>
    %177 = arith.mulf %176, %8 : vector<1x128xf32>
    %178 = arith.addf %175, %177 : vector<1x128xf32>
    %cst_31 = arith.constant 0.000000e+00 : f32
    %179 = vector.broadcast %cst_31 : f32 to vector<1x128xf32>
    %180 = arith.subf %179, %178 : vector<1x128xf32>
    %c16_i32 = arith.constant 16 : i32
    %181 = vector.broadcast %c16_i32 : i32 to vector<1x128xi32>
    %182 = arith.andi %9, %181 : vector<1x128xi32>
    %c0_i32_32 = arith.constant 0 : i32
    %183 = vector.broadcast %c0_i32_32 : i32 to vector<1x128xi32>
    %184 = arith.cmpi ne, %182, %183 : vector<1x128xi32>
    %cst_33 = arith.constant 0.000000e+00 : f32
    %185 = vector.broadcast %cst_33 : f32 to vector<1x128xf32>
    %186 = arith.select %184, %185, %180 : vector<1x128xi1>, vector<1x128xf32>
    %187 = vector.broadcast %165 : f32 to vector<25x128xf32>
    %188 = arith.mulf %187, %1 : vector<25x128xf32>
    %189 = vector.broadcast %166 : f32 to vector<25x128xf32>
    %190 = arith.mulf %189, %3 : vector<25x128xf32>
    %191 = arith.addf %188, %190 : vector<25x128xf32>
    %192 = vector.broadcast %167 : f32 to vector<25x128xf32>
    %193 = arith.mulf %192, %5 : vector<25x128xf32>
    %194 = arith.addf %191, %193 : vector<25x128xf32>
    %195 = vector.broadcast %186 : vector<1x128xf32> to vector<25x128xf32>
    %196 = arith.mulf %195, %194 : vector<25x128xf32>
    %197 = vector.broadcast %186 : vector<1x128xf32> to vector<25x128xf32>
    %198 = arith.subf %194, %197 : vector<25x128xf32>
    %199 = arith.mulf %198, %194 : vector<25x128xf32>
    %200 = arith.minimumf %196, %199 : vector<25x128xf32>
    %cst_34 = arith.constant 0.000000e+00 : f32
    %201 = vector.broadcast %cst_34 : f32 to vector<25x128xf32>
    %202 = arith.cmpf ogt, %200, %201 : vector<25x128xf32>
    %203 = arith.ori %164, %202 : vector<25x128xi1>
    %204 = arith.extui %203 : vector<25x128xi1> to vector<25x128xi32>
    %205 = arith.sitofp %204 : vector<25x128xi32> to vector<25x128xf32>
    %cst_35 = arith.constant dense<0.000000e+00> : vector<128xf32>
    %206 = vector.multi_reduction <add>, %205, %cst_35 [0] : vector<25x128xf32> to vector<128xf32>
    %207 = vector.shape_cast %206 : vector<128xf32> to vector<1x128xf32>
    %cst_36 = arith.constant 4.000000e-02 : f32
    %208 = vector.broadcast %cst_36 : f32 to vector<1x128xf32>
    %209 = arith.mulf %207, %208 : vector<1x128xf32>
    %cst_37 = arith.constant 0.000000e+00 : f32
    %cst_38 = arith.constant 1.000000e+00 : f32
    %210 = vector.broadcast %cst_37 : f32 to vector<1x128xf32>
    %211 = arith.maximumf %210, %209 : vector<1x128xf32>
    %212 = vector.broadcast %cst_38 : f32 to vector<1x128xf32>
    %213 = arith.minimumf %212, %211 : vector<1x128xf32>
    %c0_39 = arith.constant 0 : index
    %c0_40 = arith.constant 0 : index
    %214 = vector.load %arg5[%c0_39, %c0_40] : memref<5x128xf32, #tpu.memory_space<vmem>>, vector<3x128xf32>
    %c3_41 = arith.constant 3 : index
    %c0_42 = arith.constant 0 : index
    %215 = vector.load %arg5[%c3_41, %c0_42] : memref<5x128xf32, #tpu.memory_space<vmem>>, vector<1x128xf32>
    %c4_43 = arith.constant 4 : index
    %c0_44 = arith.constant 0 : index
    %216 = vector.load %arg5[%c4_43, %c0_44] : memref<5x128xf32, #tpu.memory_space<vmem>>, vector<1x128xf32>
    %cst_45 = arith.constant 5.000000e-01 : f32
    %217 = vector.broadcast %cst_45 : f32 to vector<1x128xf32>
    %218 = arith.cmpf ogt, %216, %217 : vector<1x128xf32>
    %cst_46 = arith.constant 3.000000e+01 : f32
    %219 = vector.broadcast %cst_46 : f32 to vector<1x128xf32>
    %220 = arith.mulf %219, %215 : vector<1x128xf32>
    %cst_47 = arith.constant 0.000000e+00 : f32
    %221 = vector.broadcast %cst_47 : f32 to vector<1x128xf32>
    %222 = arith.subf %221, %213 : vector<1x128xf32>
    %223 = arith.mulf %220, %222 : vector<1x128xf32>
    %cst_48 = arith.constant 0.000000e+00 : f32
    %224 = vector.broadcast %cst_48 : f32 to vector<1x128xf32>
    %225 = arith.select %218, %223, %224 : vector<1x128xi1>, vector<1x128xf32>
    %226 = vector.broadcast %225 : vector<1x128xf32> to vector<3x128xf32>
    %227 = arith.addf %214, %226 : vector<3x128xf32>
    %cst_49 = arith.constant 0.000000e+00 : f32
    %cst_50 = arith.constant 1.000000e+00 : f32
    %228 = vector.broadcast %cst_49 : f32 to vector<3x128xf32>
    %229 = arith.maximumf %228, %227 : vector<3x128xf32>
    %230 = vector.broadcast %cst_50 : f32 to vector<3x128xf32>
    %231 = arith.minimumf %230, %229 : vector<3x128xf32>
    %c0_51 = arith.constant 0 : index
    %c0_52 = arith.constant 0 : index
    %232 = vector.load %arg6[%c0_51, %c0_52] : memref<3x128xf32, #tpu.memory_space<vmem>>, vector<3x128xf32>
    tpu.vector_store %arg6[%c0_51, %c0_52], %231 {strides = array<i32>} : memref<3x128xf32, #tpu.memory_space<vmem>>, vector<3x128xf32>,
    return
  }
  func.func @transform_0(%arg0: i32) -> (i32, i32, i32) {
    %c0_i32 = arith.constant 0 : i32
    %c0_i32_0 = arith.constant 0 : i32
    %c0_i32_1 = arith.constant 0 : i32
    return %c0_i32, %c0_i32_0, %arg0 : i32, i32, i32
  }
  func.func @transform_1(%arg0: i32) -> (i32, i32) {
    %c0_i32 = arith.constant 0 : i32
    %c0_i32_0 = arith.constant 0 : i32
    return %c0_i32, %arg0 : i32, i32
  }
  func.func @transform_2(%arg0: i32) -> i32 {
    %c0_i32 = arith.constant 0 : i32
    %c0_i32_0 = arith.constant 0 : i32
    return %c0_i32 : i32
  }
  func.func @transform_3(%arg0: i32) -> (i32, i32) {
    %c0_i32 = arith.constant 0 : i32
    %c0_i32_0 = arith.constant 0 : i32
    return %c0_i32, %arg0 : i32, i32
  }
  func.func @transform_4(%arg0: i32) -> (i32, i32) {
    %c0_i32 = arith.constant 0 : i32
    %c0_i32_0 = arith.constant 0 : i32
    return %c0_i32, %arg0 : i32, i32
  }
  func.func @transform_5(%arg0: i32) -> (i32, i32) {
    %c0_i32 = arith.constant 0 : i32
    %c0_i32_0 = arith.constant 0 : i32
    return %c0_i32, %arg0 : i32, i32
  }
}

</mosaic_0001>

<bundles_post_ra>
// kernel: tpu_custom_call.1
= control target key start
LH: loop header
LB: loop body
LE: loop exit
PB: predicated region body
PF: predicated region fallthrough
CT: control target
= control target key end

     0   :  { %s1894_s0 = inlined_call_operand.hbm [shape: f32[3,25,256], index: 0, kind: input, shape index: {}]   ;;  %s1895_s1 = inlined_call_operand.hbm [shape: f32[3,256], index: 1, kind: input, shape index: {}]   ;;  %s1896_s2 = inlined_call_operand.vmem [shape: f32[20], index: 2, kind: input, shape index: {}]   ;;  %s1897_s3 = inlined_call_operand.vmem [shape: s32[1,256], index: 3, kind: input, shape index: {}]   ;;  %s1898_s4 = inlined_call_operand.hbm [shape: f32[5,256], index: 4, kind: input, shape index: {}]   ;;  %s1899_s5 = inlined_call_operand.hbm [shape: f32[3,256], index: 5, kind: output, shape index: {}]  }
   0x1   :  { %1912 = sst [smem:[#allocation22_spill]] %s1894_s0 }
   0x2   :  { %1913 = sst [smem:[#allocation23_spill]] %s1895_s1 }
   0x3   :  { %1914 = sst [smem:[#allocation24_spill]] %s1896_s2 }
   0x4   :  { %10 = vsyncpa [#allocation3], 0 }
   0x5   :  { %12 = vsyncpa [#allocation3 + $0x1], 0 }
   0x6   :  { %13 = vsyncpa [#allocation7], 0 }
   0x7   :  { %15 = vsyncpa [#allocation7 + $0x1], 0 }
   0x8   :  { %16 = vsyncpa [#allocation5], 0 }
   0x9   :  { %17 = vsyncpa [#allocation4], 0 }
   0xa   :  { %19 = vsyncpa [#allocation4 + $0x1], 0  ;;  %s1219_s18 = smov 0   ;;  %s1221_s19 = smov 0  }
   0xb   :  { %s1223_s20 = smov 0   ;;  %s1225_s21 = smov 0  }
   0xc LB: > { %1915 = sst [smem:[#allocation16_spill]] %s1166_s18  ;;  %s1240_s22 = sadd.s32 1, %s1178_s21   ;;  %s1178_s21 = sphi %s1225_s21, %s1997_s21   ;;  %s1174_s20 = sphi %s1223_s20, %s1999_s20   ;;  %s1170_s19 = sphi %s1221_s19, %s2001_s19   ;;  %s1166_s18 = sphi %s1219_s18, %s2000_s18  }
   0xd   : > { %1916 = sst [smem:[#allocation17_spill]] %s1174_s20  ;;  %s32_s23 = sadd.s32 1, %s1174_s20 }
   0xe   : > { %1917 = sst [smem:[#allocation18_spill]] %s1240_s22  ;;  %s29_s24 = ssub.s32 %s1178_s21, %s1240_s22 }
   0xf   : > { %p1900_p0 = scmp.ne.s32.totalorder %s1174_s20, %s1170_s19  ;;  %p30_p1 = scmp.eq.s32.totalorder %s29_s24, 0 }
  0x10   : > { %p40_p2 = scmp.eq.s32.totalorder %s1178_s21, 0  ;;  %p963_p4 = scmp.lt.s32.totalorder %s1178_s21, 2 }
  0x11   : > { %s1251_s25 = scalar_select %p30_p1, %s1174_s20, %s32_s23  }
  0x12   : > { %p41_p5 = por %p40_p2, %p1900_p0  ;;  %s1257_s26 = sand.u32 1, %s1174_s20  }
  0x13   : > { %1918 = sst [smem:[#allocation19_spill]] %s1251_s25  ;;  %s930_s27 = smul.u32 96, %s1257_s26 }
  0x14   : > { %s225_s28 = sand.u32 1, %s1178_s21   ;;  %p1261_p6 = pnand %p963_p4, %p41_p5 }
  0x15   : > { %s886_s30 = sshll.u32 %s1257_s26, 2  ;;  %s887_s6 = sshll.u32 %s1178_s21, 6 }
  0x16   : > { %s1920_s1 = sld [smem:[#allocation23_spill]]  ;;  %s229_s10 = scalar_lea.vmem [#allocation6], %s886_s30 }
  0x17   : > { %s236_s11 = sshll.u32 %s229_s10, 4  ;;  %s1272_s12 = scalar_lea.sflag [#allocation7], %s225_s28  ;;  %s237_s11 = int_to_ptr.vmem [resolvable:$true] %s236_s11 }
  0x18   : > { %p1278_p8 = pneg %p1261_p6 }
  0x1c   : > { %s1270_s9 = scalar_lea.hbm %s1920_s1, %s887_s6  ;;  %s1008_s17 = scalar_lea.hbm %s1920_s1, 128 }
  0x1d   : > { %s1003_s13 = scalar_lea.hbm %s1270_s9, 64  ;;  %p1009_p11 = scmp.lt.s32.totalorder %s1270_s9, %s1920_s1 }
  0x1e   : > { %p1004_p7 = scmp.ne.s32.totalorder %s1270_s9, %s1003_s13  ;;  %p1010_p12 = scmp.lt.s32.totalorder %s1008_s17, %s1003_s13 }
  0x20   : > { %p1006_p9 = pnand %p1278_p8, %p1004_p7  ;;  %p1011_p13 = por %p1010_p12, %p1009_p11 }
  0x22   : > { %p1007_p10 = pneg %p1006_p9 }
  0x24   : > { %p1012_p1 = pnand %p1011_p13, %p1007_p10 }
  0x26   : > { %1015 = shalt.err (!%p1012_p1)
}
  0x27   : > { %s1016_s28 = scalar_lea.vmem %s237_s11, 64  ;;  %s1180_s30 = smov [#allocation6]  }
  0x28   : > { %p1017_p2 = scmp.ne.s32.totalorder %s237_s11, %s1016_s28  ;;  %s1021_s6 = sshll.u32 %s1180_s30, 4  ;;  %s1022_s6 = int_to_ptr.vmem [resolvable:$false] %s1021_s6 }
  0x29   : > { %s1023_s7 = scalar_lea.vmem %s1022_s6, 128  ;;  %p1024_p7 = scmp.lt.s32.totalorder %s237_s11, %s1022_s6 }
  0x2a   : > { %p1019_p4 = pnand %p1017_p2, %p1278_p8  ;;  %p1025_p9 = scmp.lt.s32.totalorder %s1023_s7, %s1016_s28 }
  0x2c   : > { %p1020_p5 = pneg %p1019_p4  ;;  %p1026_p3 = por %p1025_p9, %p1024_p7 }
  0x2e   : > { %p1027_p0 = pnand %p1026_p3, %p1020_p5 }
  0x30   : > { %1030 = shalt.err (!%p1027_p0)
}
  0x31   : > { %954 = dma.hbm_to_vmem [thread:$0]  (!%p1261_p6), %s1270_s9, 64, %s237_s11, %s1272_s12  }
  0x32   : > { %s1298_s8 = sadd.s32 4294967295, %s1178_s21   ;;  %s881_s10 = sadd.s32 4294967294, %s1178_s21  }
  0x33   : > { %p45_p0 = scmp.ne.s32.totalorder %s1170_s19, %s1166_s18  ;;  %p1901_p3 = scmp.eq.s32.totalorder %s1298_s8, 0 }
  0x34   : > { %p168_p10 = scmp.eq.s32.totalorder %s1298_s8, 1  ;;  %p174_p11 = scmp.eq.s32.totalorder %s881_s10, 1 }
  0x35   : > { %p882_p12 = scmp.ge.s32.totalorder %s1178_s21, 1  ;;  %p1308_p13 = por %p1901_p3, %p45_p0 }
  0x36   : > { %p1923_p1 = scmp.ne.s32.totalorder %s1174_s20, %s1170_s19  ;;  %p1319_p4 = por %p174_p11, %p45_p0 }
  0x37   : > { %s1922_s13 = scalar_select %p1308_p13, 1, 0 }
  0x38   : > { %p1315_p2 = por %p168_p10, %p1923_p1  ;;  %p181_p5 = scmp.lt.s32.totalorder %s1178_s21, 3 }
  0x39   : > { %s1925_s11 = scalar_select %p1319_p4, 1, 0 }
  0x3a   : > { %s1924_s9 = scalar_select %p1315_p2, 1, 0 }
  0x3b   : > { %1926 = sst [smem:[#allocation20_spill]] %s1925_s11  ;;  %p1327_p7 = pnand %p882_p12, %p181_p5 }
  0x3c   : > { %s1927_s2 = sld [smem:[#allocation24_spill]]  ;;  %s1902_s24 = sshll.u32 %s1178_s21, 7 }
  0x3d   : > { %s1928_s23 = scalar_select %p1327_p7, 1, 0 }
  0x3e   : > { %p944_p9 = pneg %p1327_p7  ;;  %s209_s28 = scalar_lea.vmem [#allocation2], %s930_s27 }
  0x3f   : > { %s215_s30 = sshll.u32 %s209_s28, 4  ;;  %s1930_s0 = sld [smem:[#allocation22_spill]]  ;;  %s1349_s30 = int_to_ptr.vmem [resolvable:$true] %s215_s30 }
  0x40   : > { %p1338_p0 = pnand %p944_p9, %p1901_p3 }
  0x42   : > { %s194_s17 = sshll.u32 %s1927_s2, 4  ;;  %p1033_p11 = pneg %p1338_p0  ;;  %s195_s17 = int_to_ptr.vmem [resolvable:$true] %s194_s17 }
  0x43   : > { %s1031_s16 = scalar_lea.vmem %s195_s17, 16  ;;  %p1039_p5 = scmp.lt.s32.totalorder %s195_s17, %s195_s17 }
  0x44   : > { %p1032_p10 = scmp.ne.s32.totalorder %s195_s17, %s1031_s16  ;;  %p1040_p9 = scmp.lt.s32.totalorder %s1031_s16, %s1031_s16 }
  0x45   : > { %s1347_s15 = scalar_lea.hbm %s1930_s0, %s1902_s24 }
  0x46   : > { %p1034_p12 = pnand %p1033_p11, %p1032_p10  ;;  %p1041_p3 = por %p1040_p9, %p1039_p5 }
  0x48   : > { %p1035_p1 = pneg %p1034_p12 }
  0x4a   : > { %p1042_p4 = pnand %p1041_p3, %p1035_p1 }
  0x4c   : > { %1045 = shalt.err (!%p1042_p4)
}
  0x4d   : > { %s1181_s27 = smov [#allocation8]   ;;  %s888_s28 = sshll.u32 %s1257_s26, 3 }
  0x4e   : > { %947 = dma.vmem_to_smem (!%p1338_p0), %s195_s17, 16, %s1181_s27, [#allocation5]  }
  0x4f   : > { %s206_s7 = scalar_lea.sflag [#allocation3], %s1257_s26  ;;  %s1046_s10 = scalar_lea.hbm %s1347_s15, 1536 }
  0x50   : > { %p1047_p10 = scmp.ne.s32.totalorder %s1347_s15, %s1046_s10  ;;  %s1051_s1 = scalar_lea.hbm %s1930_s0, 3072 }
  0x51   : > { %p1052_p3 = scmp.lt.s32.totalorder %s1347_s15, %s1930_s0  ;;  %p1053_p4 = scmp.lt.s32.totalorder %s1051_s1, %s1046_s10 }
  0x52   : > { %p1049_p11 = pnand %p1047_p10, %p1278_p8 }
  0x53   : > { %p1054_p1 = por %p1053_p4, %p1052_p3 }
  0x54   : > { %p1050_p12 = pneg %p1049_p11 }
  0x56   : > { %p1055_p5 = pnand %p1054_p1, %p1050_p12 }
  0x58   : > { %1058 = shalt.err (!%p1055_p5)
}
  0x59   : > { %s1059_s17 = scalar_lea.vmem %s1349_s30, 1536  ;;  %s1182_s27 = smov [#allocation2]  }
  0x5a   : > { %p1060_p0 = scmp.ne.s32.totalorder %s1349_s30, %s1059_s17  ;;  %s1064_s24 = sshll.u32 %s1182_s27, 4  ;;  %s1065_s24 = int_to_ptr.vmem [resolvable:$false] %s1064_s24 }
  0x5b   : > { %s1066_s16 = scalar_lea.vmem %s1065_s24, 3072  ;;  %p1067_p11 = scmp.lt.s32.totalorder %s1349_s30, %s1065_s24 }
  0x5c   : > { %p1062_p9 = pnand %p1060_p0, %p1278_p8  ;;  %p1068_p2 = scmp.lt.s32.totalorder %s1066_s16, %s1059_s17 }
  0x5e   : > { %p1063_p10 = pneg %p1062_p9  ;;  %p1069_p13 = por %p1068_p2, %p1067_p11 }
  0x60   : > { %p1070_p7 = pnand %p1069_p13, %p1063_p10 }
  0x62   : > { %1073 = shalt.err (!%p1070_p7)
}
  0x63   : > { %s1183_s1 = smov 256   ;;  %s1184_s2 = smov 128  }
  0x64   : > { %s1185_s10 = smov 8   ;;  %s1931_s6 = sshll.u32 %s1178_s21, 7 }
  0x65   : > { %951 = dma.hbm_to_vmem [thread:$0]  (!%p1261_p6), %s1347_s15, 1536, %s1349_s30, %s206_s7, %s1183_s1, %s1184_s2, %s1185_s10  }
  0x66   : > { %s258_s17 = scalar_lea.hbm %s1898_s4, %s1931_s6  ;;  %s253_s16 = scalar_lea.vmem [#allocation9], %s888_s28 }
  0x67   : > { %s260_s0 = sshll.u32 %s253_s16, 4  ;;  %s1074_s25 = scalar_lea.hbm %s258_s17, 128  ;;  %s261_s0 = int_to_ptr.vmem [resolvable:$true] %s260_s0 }
  0x68   : > { %p1075_p13 = scmp.ne.s32.totalorder %s258_s17, %s1074_s25  ;;  %s1079_s11 = scalar_lea.hbm %s1898_s4, 256 }
  0x69   : > { %p1080_p12 = scmp.lt.s32.totalorder %s258_s17, %s1898_s4  ;;  %p1081_p3 = scmp.lt.s32.totalorder %s1079_s11, %s1074_s25 }
  0x6a   : > { %p1077_p2 = pnand %p1075_p13, %p1278_p8 }
  0x6b   : > { %p1082_p4 = por %p1081_p3, %p1080_p12 }
  0x6c   : > { %p1078_p7 = pneg %p1077_p2 }
  0x6e   : > { %p1083_p1 = pnand %p1082_p4, %p1078_p7 }
  0x70   : > { %1086 = shalt.err (!%p1083_p1)
}
  0x71   : > { %s1087_s26 = scalar_lea.vmem %s261_s0, 128  ;;  %s1186_s15 = smov [#allocation9]  }
  0x72   : > { %p1088_p5 = scmp.ne.s32.totalorder %s261_s0, %s1087_s26  ;;  %s1092_s28 = sshll.u32 %s1186_s15, 4  ;;  %s1093_s28 = int_to_ptr.vmem [resolvable:$false] %s1092_s28 }
  0x73   : > { %s1094_s7 = scalar_lea.vmem %s1093_s28, 256  ;;  %p1095_p10 = scmp.lt.s32.totalorder %s261_s0, %s1093_s28 }
  0x74   : > { %p1090_p0 = pnand %p1088_p5, %p1278_p8  ;;  %p1096_p11 = scmp.lt.s32.totalorder %s1094_s7, %s1087_s26 }
  0x76   : > { %p1091_p9 = pneg %p1090_p0  ;;  %p1097_p13 = por %p1096_p11, %p1095_p10 }
  0x78   : > { %p1098_p2 = pnand %p1097_p13, %p1091_p9 }
  0x7a   : > { %1101 = shalt.err (!%p1098_p2)
}
  0x7b   : > { %957 = dma.hbm_to_vmem [thread:$0]  (!%p1261_p6), %s258_s17, 128, %s261_s0, %s1272_s12  }
  0x7c   : > { %p1932_p7 = scmp.ne.s32.totalorder %s1928_s23, 0 }
  0x7e   : > { %269 = sbr.rel (%p1932_p7) target bundleno = 277 (0x115), region = 40 }
  0x83   : > { %s1402_s18 = sand.u32 1, %s1170_s19   ;;  %p1933_p8 = scmp.ne.s32.totalorder %s1922_s13, 0 }
  0x84   : > { %s931_s20 = smul.u32 96, %s1402_s18  ;;  %s272_s22 = scalar_lea.sflag [#allocation3], %s1402_s18 }
  0x86   : > { %s1406_s25 = scalar_lea.vmem [#allocation2], %s931_s20 }
  0x87   : > { %1145 = dma.done.wait (%p1933_p8), %s272_s22, 1536  }
  0x88   : > { %1147 = vsyncadd (%p1933_p8), %s272_s22, 4294965760  ;;  %s280_s0 = sand.u32 1, %s1298_s8   ;;  %s891_s29 = sshll.u32 %s1402_s18, 2 }
  0x89   : > { %s281_s12 = scalar_lea.sflag [#allocation7], %s280_s0  ;;  %s1416_s14 = scalar_lea.vmem [#allocation6], %s891_s29 }
  0x8a   : > { %1149 = dma.done.wait (%p1933_p8), %s281_s12, 64  }
  0x8b   : > { %1151 = vsyncadd (%p1933_p8), %s281_s12, 4294967232  ;;  %p1934_p6 = scmp.eq.s32.totalorder %s1298_s8, 0 }
  0x8d   : > { %1153 = dma.done.wait (%p1934_p6), [#allocation5], 16   ;;  %p1935_p12 = pmov %p1934_p6 }
  0x8e   : > { %s893_s11 = sshll.u32 %s1402_s18, 3 }
  0x8f   : > { %1155 = vsyncadd (%p1935_p12), [#allocation5], 4294967280  ;;  %s1427_s23 = scalar_lea.vmem [#allocation9], %s893_s11 }
  0x90   : > { %1157 = dma.done.wait (%p1933_p8), %s281_s12, 128  }
  0x91   : > { %1159 = vsyncadd (%p1933_p8), %s281_s12, 4294967168 }
  0x92   : > { %302 = sfence }
  0x93   : > { %p338_p3 = scmp.lt.s32.totalorder %s1298_s8, 1  ;;  %s359_s1 = sld [smem:[#allocation8]]  ;;  %v398_v0 = vlaneseq  ;;  %v1436_v1 = vld [vmem:[%s1406_s25] sm:$0xff]  ;;  %v1439_v2 = vld [vmem:[%s1406_s25 + $0x8] sm:$0xff]  ;;  %v1442_v3 = vld [vmem:[%s1406_s25 + $0x10] sm:$0xff] }
  0x94   : > { %s903_s10 = sld [smem:[#allocation8 + $0x1]]  ;;  %v1445_v4 = vld [vmem:[%s1406_s25 + $0x18] sm:$0x1]  ;;  %v1448_v5 = vld [vmem:[%s1406_s25 + $0x20] sm:$0xff]  ;;  %v1459_v7 = vld [vmem:[%s1406_s25 + $0x28] sm:$0xff]  ;;  %p1992_p1 = scmp.ne.s32.totalorder %s1924_s9, 0 }
  0x95   : > { %s339_s2 = scalar_select %p338_p3, %s1298_s8, 1  ;;  %v1451_v6 = vld [vmem:[%s1416_s14] sm:$0x1]  ;;  %v1462_v8 = vld [vmem:[%s1406_s25 + $0x30] sm:$0xff]  ;;  %v1465_v9 = vld [vmem:[%s1406_s25 + $0x38] sm:$0x1] }
  0x96   : > { %s904_s13 = sld [smem:[#allocation8 + $0x2]]  ;;  %1936 = vst [vmem:[#allocation21_spill] sm:$0xff] %v1465_v9  ;;  %v1470_v11 = vld [vmem:[%s1416_s14 + $0x1] sm:$0x1]  ;;  %v399_v12 = vshrl.u32 %v398_v0, 7  ;;  %v1498_v30 = vld [vmem:[%s1406_s25 + $0x48] sm:$0xff] }
  0x97   : > { %s1453_s6 = sld [smem:[#allocation8 + $0x3]]  ;;  %s340_s17 = scalar_lea.vmem %s1897_s3, %s339_s2  ;;  %v1480_v17 = vld [vmem:[%s1416_s14 + $0x2] sm:$0x1]  ;;  %v1501_v31 = vld [vmem:[%s1406_s25 + $0x50] sm:$0xff]  ;;  %v1504_v32 = vld [vmem:[%s1406_s25 + $0x58] sm:$0x1] }
  0x98   : > { %s1467_s16 = sld [smem:[#allocation8 + $0x4]]  ;;  %v1482_v18 = vld [vmem:[%s340_s17] sm:$0x1]  ;;  %v1495_v29 = vsub.s32 0, %v399_v12 }
  0x99   : > { %v363_v10 = vstv %s359_s1  ;;  %s1472_s30 = sld [smem:[#allocation8 + $0x5]]  ;;  %v1489_v23 = vld [vmem:[%s1406_s25 + $0x40] sm:$0xff]  ;;  %v374_v35 = vand.u32 1, %v1482_v18  ;;  %v438_v55 = vand.u32 2, %v1482_v18 }
  0x9a   : > { %v364_v13 = vmul.f32 %v363_v10, %v1451_v6  ;;  %v367_v14 = vstv %s903_s10  ;;  %v377_v15 = vmul.f32 %v363_v10, %v1436_v1  ;;  %v378_v16 = vmul.f32 %v363_v10, %v1439_v2  ;;  %s1477_s26 = sld [smem:[#allocation8 + $0x6]] }
  0x9b   : > { %v379_v19 = vmul.f32 %v363_v10, %v1442_v3  ;;  %v381_v20 = vmul.f32 %v1448_v5, %v367_v14  ;;  %v382_v21 = vmul.f32 %v1459_v7, %v367_v14  ;;  %v383_v22 = vmul.f32 %v1462_v8, %v367_v14  ;;  %s909_s15 = sld [smem:[#allocation8 + $0x7]] }
  0x9c   : > { %v368_v24 = vmul.f32 %v367_v14, %v1470_v11  ;;  %v370_v25 = vstv %s904_s13  ;;  %v380_v26 = vmul.f32 %v363_v10, %v1445_v4  ;;  %v384_v27 = vmul.f32 %v1465_v9, %v367_v14  ;;  %s1524_s28 = sld [smem:[#allocation8 + $0x8]]  ;;  %s927_s13 = sshll.u32 %s1298_s8, 6 }
  0x9d   : > { %v365_v28 = vstv %s1453_s6  ;;  %v371_v34 = vmul.f32 %v370_v25, %v1480_v17  ;;  %v385_v36 = vadd.f32 %v381_v20, %v377_v15  ;;  %v386_v37 = vadd.f32 %v382_v21, %v378_v16  ;;  %s1530_s7 = sld [smem:[#allocation8 + $0x9]]  ;;  %s337_s6 = scalar_lea.vmem [#allocation10], %s891_s29 }
  0x9e   : > { %v366_v33 = vadd.f32 %v365_v28, %v364_v13  ;;  %v387_v38 = vadd.f32 %v383_v22, %v379_v19  ;;  %v389_v39 = vmul.f32 %v1489_v23, %v370_v25  ;;  %v427_v40 = vstv %s1467_s16  ;;  %s1534_s20 = sld [smem:[#allocation8 + $0xb]]  ;;  %s747_s27 = sshll.u32 %s337_s6, 4  ;;  %s748_s27 = int_to_ptr.vmem [resolvable:$true] %s747_s27 }
  0x9f   : > { %v388_v42 = vadd.f32 %v384_v27, %v380_v26  ;;  %v428_v43 = vmul.f32 %v427_v40, %v1451_v6  ;;  %v431_v44 = vstv %s1472_s30  ;;  %v390_v45 = vmul.f32 %v1498_v30, %v370_v25  ;;  %s1536_s22 = sld [smem:[#allocation8 + $0xa]]  ;;  %s745_s16 = scalar_lea.hbm %s1899_s5, %s927_s13 }
  0xa0   : > { %v369_v41 = vadd.f32 %v368_v24, %v366_v33  ;;  %v391_v46 = vmul.f32 %v1501_v31, %v370_v25  ;;  %v392_v47 = vmul.f32 %v1504_v32, %v370_v25  ;;  %v432_v51 = vmul.f32 %v431_v44, %v1470_v11  ;;  %s1578_s25 = sld [smem:[#allocation8 + $0xc]]  ;;  %s734_s30 = scalar_lea.sflag [#allocation4], %s1402_s18 }
  0xa1   : > { %v429_v48 = vstv %s909_s15  ;;  %v434_v52 = vstv %s1477_s26  ;;  %vm375_vm0 = vcmp.ne.s32.totalorder %v374_v35, 0  ;;  %v393_v53 = vadd.f32 %v389_v39, %v385_v36  ;;  %s1587_s0 = sld [smem:[#allocation8 + $0xf]]  ;;  %s1102_s26 = scalar_lea.vmem %s748_s27, 64 }
  0xa2   : > { %v372_v49 = vadd.f32 %v371_v34, %v369_v41  ;;  %v430_v50 = vadd.f32 %v429_v48, %v428_v43  ;;  %v435_v54 = vmul.f32 %v434_v52, %v1480_v17  ;;  %v441_v58 = vmul.f32 %v427_v40, %v1436_v1  ;;  %s1594_s12 = sld [smem:[#allocation8 + $0xd]]  ;;  %p1103_p4 = scmp.ne.s32.totalorder %s748_s27, %s1102_s26 }
  0xa3   : > { %v445_v59 = vmul.f32 %v1448_v5, %v431_v44  ;;  %v394_v60 = vadd.f32 %v390_v45, %v386_v37  ;;  %v395_v61 = vadd.f32 %v391_v46, %v387_v38  ;;  %v396_v62 = vadd.f32 %v392_v47, %v388_v42  ;;  %s1604_s14 = sld [smem:[#allocation8 + $0xe]] }
  0xa4   : > { %v373_v56 = vsub.f32 0.0, %v372_v49  ;;  %v433_v57 = vadd.f32 %v432_v51, %v430_v50  ;;  %v442_v63 = vmul.f32 %v427_v40, %v1439_v2  ;;  %v443_v12 = vmul.f32 %v427_v40, %v1442_v3  ;;  %s1647_s11 = sld [smem:[#allocation8 + $0x10]]  ;;  %p1104_p5 = pnand %p1103_p4, %p1992_p1 }
  0xa5   : > { %v446_v13 = vmul.f32 %v1459_v7, %v431_v44  ;;  %v444_v15 = vmul.f32 %v427_v40, %v1445_v4  ;;  %v447_v16 = vmul.f32 %v1462_v8, %v431_v44  ;;  %v448_v19 = vmul.f32 %v1465_v9, %v431_v44  ;;  %s1650_s1 = sld [smem:[#allocation8 + $0x11]] }
  0xa6   : > { %v376_v0 = vsel %vm375_vm0, 0.0, %v373_v56  ;;  %v436_v10 = vadd.f32 %v435_v54, %v433_v57  ;;  %v449_v21 = vadd.f32 %v445_v59, %v441_v58  ;;  %v453_v22 = vmul.f32 %v1489_v23, %v434_v52  ;;  %s1654_s2 = sld [smem:[#allocation8 + $0x13]]  ;;  %p1105_p0 = pneg %p1104_p5 }
  0xa7   : > { %v401_v14 = vrot.slane %v376_v0, %v1495_v29  ;;  %vm439_vm1 = vcmp.ne.s32.totalorder %v438_v55, 0  ;;  %v454_v24 = vmul.f32 %v1498_v30, %v434_v52  ;;  %v450_v28 = vadd.f32 %v446_v13, %v442_v63  ;;  %s1659_s10 = sld [smem:[#allocation8 + $0x12]] }
  0xa8   : > { %v437_v20 = vsub.f32 0.0, %v436_v10  ;;  %v451_v34 = vadd.f32 %v447_v16, %v443_v12  ;;  %v452_v35 = vadd.f32 %v448_v19, %v444_v15  ;;  %v506_v36 = vand.u32 4, %v1482_v18 }
  0xa9   : > { %v407_v25 = vsub.f32 %v393_v53, %v401_v14  ;;  %v408_v26 = vsub.f32 %v394_v60, %v401_v14  ;;  %v409_v27 = vsub.f32 %v395_v61, %v401_v14  ;;  %v410_v33 = vsub.f32 %v396_v62, %v401_v14 }
  0xaa   : > { %v440_v37 = vsel %vm439_vm1, 0.0, %v437_v20  ;;  %v455_v38 = vmul.f32 %v1501_v31, %v434_v52  ;;  %v456_v39 = vmul.f32 %v1504_v32, %v434_v52  ;;  %v457_v40 = vadd.f32 %v453_v22, %v449_v21 }
  0xab   : > { %v1541_v41 = vmul.f32 %v401_v14, %v393_v53  ;;  %v1543_v42 = vmul.f32 %v401_v14, %v394_v60  ;;  %v1545_v43 = vmul.f32 %v407_v25, %v393_v53  ;;  %v1547_v44 = vmul.f32 %v408_v26, %v394_v60 }
  0xac   : > { %v1549_v45 = vmul.f32 %v401_v14, %v395_v61  ;;  %v1551_v46 = vmul.f32 %v401_v14, %v396_v62  ;;  %v1553_v47 = vmul.f32 %v409_v27, %v395_v61  ;;  %v458_v48 = vadd.f32 %v454_v24, %v450_v28 }
  0xad   : > { %v1555_v49 = vmul.f32 %v410_v33, %v396_v62  ;;  %v1558_v50 = vrot.slane %v440_v37, %v1495_v29  ;;  %v495_v51 = vstv %s1524_s28  ;;  %v499_v52 = vstv %s1530_s7 }
  0xae   : > { %v459_v53 = vadd.f32 %v455_v38, %v451_v34  ;;  %v574_v54 = vand.u32 8, %v1482_v18  ;;  %v460_v58 = vadd.f32 %v456_v39, %v452_v35  ;;  %v497_v59 = vstv %s1534_s20 }
  0xaf   : > { %vm1569_vm2 = vcmp.ne.s32.totalorder %v506_v36, 0  ;;  %v496_v62 = vmul.f32 %v495_v51, %v1451_v6  ;;  %v500_v63 = vmul.f32 %v499_v52, %v1470_v11  ;;  %v502_v0 = vstv %s1536_s22 }
  0xb0   : > { %v1583_v12 = vmul.f32 %v1558_v50, %v457_v40  ;;  %v471_v13 = vsub.f32 %v457_v40, %v1558_v50  ;;  %v472_v14 = vsub.f32 %v458_v48, %v1558_v50  ;;  %v1590_v15 = vmul.f32 %v1558_v50, %v458_v48 }
  0xb1   : > { %v498_v16 = vadd.f32 %v497_v59, %v496_v62  ;;  %v503_v19 = vmul.f32 %v502_v0, %v1480_v17  ;;  %v509_v20 = vmul.f32 %v495_v51, %v1436_v1  ;;  %v1597_v21 = vmul.f32 %v1558_v50, %v459_v53 }
  0xb2   : > { %v1600_v22 = vmul.f32 %v1558_v50, %v460_v58  ;;  %v510_v24 = vmul.f32 %v495_v51, %v1439_v2  ;;  %v511_v25 = vmul.f32 %v495_v51, %v1442_v3  ;;  %v512_v27 = vmul.f32 %v495_v51, %v1445_v4 }
  0xb3   : > { %v501_v26 = vadd.f32 %v500_v63, %v498_v16  ;;  %v513_v28 = vmul.f32 %v1448_v5, %v499_v52  ;;  %v514_v33 = vmul.f32 %v1459_v7, %v499_v52  ;;  %v473_v34 = vsub.f32 %v459_v53, %v1558_v50 }
  0xb4   : > { %v474_v35 = vsub.f32 %v460_v58, %v1558_v50  ;;  %v1611_v36 = vmul.f32 %v471_v13, %v457_v40  ;;  %v1613_v37 = vmul.f32 %v472_v14, %v458_v48  ;;  %v515_v39 = vmul.f32 %v1462_v8, %v499_v52 }
  0xb5   : > { %v504_v38 = vadd.f32 %v503_v19, %v501_v26  ;;  %v516_v59 = vmul.f32 %v1465_v9, %v499_v52  ;;  %v517_v51 = vadd.f32 %v513_v28, %v509_v20  ;;  %v518_v62 = vadd.f32 %v514_v33, %v510_v24 }
  0xb6   : > { %v521_v63 = vmul.f32 %v1489_v23, %v502_v0  ;;  %v522_v16 = vmul.f32 %v1498_v30, %v502_v0  ;;  %v523_v55 = vmul.f32 %v1501_v31, %v502_v0  ;;  %v519_v50 = vadd.f32 %v515_v39, %v511_v25 }
  0xb7   : > { %v505_v40 = vsub.f32 0.0, %v504_v38  ;;  %v520_v48 = vadd.f32 %v516_v59, %v512_v27  ;;  %v524_v13 = vmul.f32 %v1504_v32, %v502_v0  ;;  %v1621_v14 = vmul.f32 %v473_v34, %v459_v53 }
  0xb8   : > { %v525_v19 = vadd.f32 %v521_v63, %v517_v51  ;;  %v563_v26 = vstv %s1578_s25  ;;  %v565_v52 = vstv %s1587_s0  ;;  %v526_v24 = vadd.f32 %v522_v16, %v518_v62 }
  0xb9   : > { %v508_v20 = vsel %vm1569_vm2, 0.0, %v505_v40  ;;  %v527_v28 = vadd.f32 %v523_v55, %v519_v50  ;;  %v564_v33 = vmul.f32 %v563_v26, %v1451_v6  ;;  %vm1628_vm3 = vcmp.ne.s32.totalorder %v574_v54, 0 }
  0xba   : > { %v528_v25 = vadd.f32 %v524_v13, %v520_v48  ;;  %v533_v27 = vrot.slane %v508_v20, %v1495_v29  ;;  %v567_v0 = vstv %s1594_s12  ;;  %v570_v53 = vstv %s1604_s14 }
  0xbb   : > { %v1635_v34 = vmul.f32 %v474_v35, %v460_v58  ;;  %v479_v38 = vmin.f32 %v1583_v12, %v1611_v36  ;;  %v566_v60 = vadd.f32 %v565_v52, %v564_v33  ;;  %v568_v39 = vmul.f32 %v567_v0, %v1470_v11 }
  0xbc   : > { %v480_v55 = vmin.f32 %v1590_v15, %v1613_v37  ;;  %v571_v54 = vmul.f32 %v570_v53, %v1480_v17  ;;  %v577_v59 = vmul.f32 %v563_v26, %v1436_v1  ;;  %v578_v51 = vmul.f32 %v563_v26, %v1439_v2 }
  0xbd   : > { %v535_v62 = vmul.f32 %v533_v27, %v525_v19  ;;  %v1645_v63 = vmul.f32 %v533_v27, %v526_v24  ;;  %v539_v58 = vsub.f32 %v525_v19, %v533_v27  ;;  %v540_v35 = vsub.f32 %v526_v24, %v533_v27 }
  0xbe   : > { %v541_v12 = vsub.f32 %v527_v28, %v533_v27  ;;  %v542_v36 = vsub.f32 %v528_v25, %v533_v27  ;;  %v569_v16 = vadd.f32 %v568_v39, %v566_v60  ;;  %v581_v40 = vmul.f32 %v1448_v5, %v567_v0 }
  0xbf   : > { %v543_v15 = vmul.f32 %v539_v58, %v525_v19  ;;  %v544_v37 = vmul.f32 %v540_v35, %v526_v24  ;;  %v579_v50 = vmul.f32 %v563_v26, %v1442_v3  ;;  %v580_v48 = vmul.f32 %v563_v26, %v1445_v4 }
  0xc0   : > { %v572_v13 = vadd.f32 %v571_v54, %v569_v16  ;;  %v582_v52 = vmul.f32 %v1459_v7, %v567_v0  ;;  %v583_v20 = vmul.f32 %v1462_v8, %v567_v0  ;;  %v584_v33 = vmul.f32 %v1465_v9, %v567_v0 }
  0xc1   : > { %v481_v60 = vmin.f32 %v1597_v21, %v1621_v14  ;;  %v482_v19 = vmin.f32 %v1600_v22, %v1635_v34  ;;  %v537_v24 = vmul.f32 %v533_v27, %v527_v28  ;;  %v538_v39 = vmul.f32 %v533_v27, %v528_v25 }
  0xc2   : > { %v545_v26 = vmul.f32 %v541_v12, %v527_v28  ;;  %v573_v58 = vsub.f32 0.0, %v572_v13  ;;  %v585_v54 = vadd.f32 %v581_v40, %v577_v59  ;;  %v586_v35 = vadd.f32 %v582_v52, %v578_v51 }
  0xc3   : > { %v546_v16 = vmul.f32 %v542_v36, %v528_v25  ;;  %v547_v61 = vmin.f32 %v535_v62, %v543_v15  ;;  %v548_v57 = vmin.f32 %v1645_v63, %v544_v37  ;;  %v587_v0 = vadd.f32 %v583_v20, %v579_v50 }
  0xc4   : > { %v576_v56 = vsel %vm1628_vm3, 0.0, %v573_v58  ;;  %v588_v9 = vadd.f32 %v584_v33, %v580_v48  ;;  %v589_v21 = vmul.f32 %v1489_v23, %v570_v53  ;;  %v590_v22 = vmul.f32 %v1498_v30, %v570_v53 }
  0xc5   : > { %v1941_v14 = vmin.f32 %v1541_v41, %v1545_v43  ;;  %vm1677_vm5 = vcmp.gt.f32.partialorder %v479_v38, 0.0  ;;  %v591_v10 = vmul.f32 %v1501_v31, %v570_v53  ;;  %v592_v27 = vmul.f32 %v1504_v32, %v570_v53 }
  0xc6   : > { %v601_v34 = vrot.slane %v576_v56, %v1495_v29  ;;  %v631_v59 = vstv %s1647_s11  ;;  %v1946_v41 = vmin.f32 %v1543_v42, %v1547_v44  ;;  %vm1692_vm7 = vcmp.gt.f32.partialorder %v480_v55, 0.0 }
  0xc7   : > { %vm1673_vm4 = vcmp.gt.f32.partialorder %v1941_v14, 0.0  ;;  %v549_v51 = vmin.f32 %v537_v24, %v545_v26  ;;  %v593_v62 = vadd.f32 %v589_v21, %v585_v54  ;;  %v594_v63 = vadd.f32 %v590_v22, %v586_v35 }
  0xc8   : > { %vm1688_vm6 = vcmp.gt.f32.partialorder %v1946_v41, 0.0  ;;  %v632_v53 = vmul.f32 %v631_v59, %v1451_v6  ;;  %v1951_v56 = vmin.f32 %v1549_v45, %v1553_v47  ;;  %vm1704_vm9 = vcmp.gt.f32.partialorder %v481_v60, 0.0  ;;  %vm487_vm1 = vmor %vm1673_vm4, %vm1677_vm5 }
  0xc9   : > { %v595_v44 = vadd.f32 %v591_v10, %v587_v0  ;;  %v596_v55 = vadd.f32 %v592_v27, %v588_v9  ;;  %v633_v36 = vstv %s1654_s2  ;;  %v635_v40 = vstv %s1650_s1  ;;  %vm1979_vm4 = vmor %vm1688_vm6, %vm1692_vm7 }
  0xca   : > { %vm1700_vm8 = vcmp.gt.f32.partialorder %v1951_v56, 0.0  ;;  %v1956_v15 = vmin.f32 %v1551_v46, %v1555_v49  ;;  %vm1717_vm11 = vcmp.gt.f32.partialorder %v482_v19, 0.0  ;;  %v550_v47 = vmin.f32 %v538_v39, %v546_v16 }
  0xcb   : > { %v607_v37 = vsub.f32 %v593_v62, %v601_v34  ;;  %v608_v50 = vsub.f32 %v594_v63, %v601_v34  ;;  %v638_v48 = vstv %s1659_s10  ;;  %vm1722_vm12 = vcmp.gt.f32.partialorder %v547_v61, 0.0 }
  0xcc   : > { %vm1713_vm10 = vcmp.gt.f32.partialorder %v1956_v15, 0.0  ;;  %v603_v9 = vmul.f32 %v601_v34, %v593_v62  ;;  %v609_v52 = vsub.f32 %v595_v44, %v601_v34  ;;  %v610_v20 = vsub.f32 %v596_v55, %v601_v34 }
  0xcd   : > { %vm1726_vm13 = vcmp.gt.f32.partialorder %v548_v57, 0.0  ;;  %v604_v49 = vmul.f32 %v601_v34, %v594_v63  ;;  %v611_v33 = vmul.f32 %v607_v37, %v593_v62  ;;  %v634_v60 = vadd.f32 %v633_v36, %v632_v53  ;;  %v1972_v62 = vld [vmem:[#allocation21_spill] sm:$0xff]  ;;  %vm1985_vm6 = vmor %vm1713_vm10, %vm1717_vm11 }
  0xce   : > { %v636_v19 = vmul.f32 %v635_v40, %v1470_v11  ;;  %v605_v24 = vmul.f32 %v601_v34, %v595_v44  ;;  %v612_v39 = vmul.f32 %v608_v50, %v594_v63  ;;  %v613_v26 = vmul.f32 %v609_v52, %v595_v44  ;;  %vm1803_vm5 = vmor %vm1979_vm4, %vm1726_vm13 }
  0xcf   : > { %v639_v61 = vmul.f32 %v638_v48, %v1480_v17  ;;  %vm1732_vm14 = vcmp.gt.f32.partialorder %v549_v51, 0.0  ;;  %vm1736_vm15 = vcmp.gt.f32.partialorder %v550_v47, 0.0  ;;  %v606_v57 = vmul.f32 %v601_v34, %v596_v55 }
  0xd0   : > { %v637_v35 = vadd.f32 %v636_v19, %v634_v60  ;;  %v614_v16 = vmul.f32 %v610_v20, %v596_v55  ;;  %v1969_v0 = vand.u32 16, %v1482_v18  ;;  %v645_v21 = vmul.f32 %v631_v59, %v1436_v1  ;;  %vm1825_vm7 = vmor %vm1985_vm6, %vm1736_vm15 }
  0xd1   : > { %v646_v17 = vmul.f32 %v631_v59, %v1439_v2  ;;  %v615_v22 = vmin.f32 %v603_v9, %v611_v33  ;;  %v647_v10 = vmul.f32 %v631_v59, %v1442_v3  ;;  %v648_v27 = vmul.f32 %v631_v59, %v1445_v4 }
  0xd2   : > { %vm1742_vm0 = vcmp.ne.s32.totalorder %v1969_v0, 0  ;;  %v640_v14 = vadd.f32 %v639_v61, %v637_v35  ;;  %v616_v41 = vmin.f32 %v604_v49, %v612_v39  ;;  %v617_v34 = vmin.f32 %v605_v24, %v613_v26 }
  0xd3   : > { %v649_v51 = vmul.f32 %v1448_v5, %v635_v40  ;;  %v650_v18 = vmul.f32 %v1459_v7, %v635_v40  ;;  %v651_v2 = vmul.f32 %v1462_v8, %v635_v40  ;;  %v652_v63 = vmul.f32 %v1972_v62, %v635_v40 }
  0xd4   : > { %v641_v1 = vsub.f32 0.0, %v640_v14  ;;  %v657_v3 = vmul.f32 %v1489_v23, %v638_v48  ;;  %v658_v7 = vmul.f32 %v1498_v30, %v638_v48  ;;  %v659_v59 = vmul.f32 %v1501_v31, %v638_v48 }
  0xd5   : > { %v653_v4 = vadd.f32 %v649_v51, %v645_v21  ;;  %v654_v5 = vadd.f32 %v650_v18, %v646_v17  ;;  %v655_v23 = vadd.f32 %v651_v2, %v647_v10  ;;  %v656_v53 = vadd.f32 %v652_v63, %v648_v27  ;;  %v719_v18 = vld [vmem:[%s1427_s23 + $0x4] sm:$0x1]  ;;  %v717_v63 = vld [vmem:[%s1427_s23] sm:$0x7] }
  0xd6   : > { %v644_v8 = vsel %vm1742_vm0, 0.0, %v641_v1  ;;  %v660_v56 = vmul.f32 %v1504_v32, %v638_v48  ;;  %v618_v30 = vmin.f32 %v606_v57, %v614_v16  ;;  %vm1784_vm0 = vmor %vm487_vm1, %vm1722_vm12  ;;  %vm1788_vm3 = vcmp.gt.f32.partialorder %v615_v22, 0.0 }
  0xd7   : > { %v661_v44 = vadd.f32 %v657_v3, %v653_v4  ;;  %v662_v31 = vadd.f32 %v658_v7, %v654_v5  ;;  %v669_v55 = vrot.slane %v644_v8, %v1495_v29  ;;  %vm1792_vm2 = vcmp.gt.f32.partialorder %v616_v41, 0.0  ;;  %vm1982_vm12 = vmor %vm1700_vm8, %vm1704_vm9  ;;  %v718_v41 = vld [vmem:[%s1427_s23 + $0x3] sm:$0x1]  ;;  %s1188_s23 = smov [#allocation10]  }
  0xd8   : > { %v663_v15 = vadd.f32 %v659_v59, %v655_v23  ;;  %v664_v47 = vadd.f32 %v660_v56, %v656_v53  ;;  %vm1814_vm1 = vmor %vm1982_vm12, %vm1732_vm14  ;;  %vm1829_vm8 = vcmp.gt.f32.partialorder %v617_v34, 0.0  ;;  %vm1833_vm9 = vcmp.gt.f32.partialorder %v618_v30, 0.0  ;;  %s1106_s15 = sshll.u32 %s1188_s23, 4  ;;  %s1107_s15 = int_to_ptr.vmem [resolvable:$false] %s1106_s15 }
  0xd9   : > { %v671_v25 = vmul.f32 %v669_v55, %v661_v44  ;;  %v672_v37 = vmul.f32 %v669_v55, %v662_v31  ;;  %v675_v50 = vsub.f32 %v661_v44, %v669_v55  ;;  %v676_v48 = vsub.f32 %v662_v31, %v669_v55  ;;  %vm623_vm13 = vmor %vm1784_vm0, %vm1788_vm3  ;;  %s1108_s8 = scalar_lea.vmem %s1107_s15, 128  ;;  %p1109_p9 = scmp.lt.s32.totalorder %s748_s27, %s1107_s15 }
  0xda   : > { %v673_v38 = vmul.f32 %v669_v55, %v663_v15  ;;  %v674_v13 = vmul.f32 %v669_v55, %v664_v47  ;;  %v677_v9 = vsub.f32 %v663_v15, %v669_v55  ;;  %v678_v52 = vsub.f32 %v664_v47, %v669_v55  ;;  %vm624_vm10 = vmor %vm1803_vm5, %vm1792_vm2  ;;  %p1110_p10 = scmp.lt.s32.totalorder %s1108_s8, %s1102_s26 }
  0xdb   : > { %v679_v20 = vmul.f32 %v675_v50, %v661_v44  ;;  %v680_v46 = vmul.f32 %v676_v48, %v662_v31  ;;  %vm625_vm11 = vmor %vm1814_vm1, %vm1829_vm8  ;;  %v1187_v39 = vmov 0.0   ;;  %vm705_vm6 = vcmask 1040384  }
  0xdc   : > { %v681_v6 = vmul.f32 %v677_v9, %v663_v15  ;;  %v682_v45 = vmul.f32 %v678_v52, %v664_v47  ;;  %vm626_vm14 = vmor %vm1825_vm7, %vm1833_vm9  ;;  %v721_v1 = vmul.f32 30.0, %v718_v41  ;;  %vm720_vm7 = vcmp.gt.f32.partialorder %v719_v18, 0.5  ;;  %p1111_p11 = por %p1110_p10, %p1109_p9 }
  0xdd   : > { %v683_v33 = vmin.f32 %v671_v25, %v679_v20  ;;  %v684_v60 = vmin.f32 %v672_v37, %v680_v46 }
  0xde   : > { %v685_v19 = vmin.f32 %v673_v38, %v681_v6  ;;  %v686_v24 = vmin.f32 %v674_v13, %v682_v45  ;;  %p1112_p13 = pnand %p1111_p11, %p1105_p0 }
  0xdf   : > { %vm687_vm15 = vcmp.gt.f32.partialorder %v683_v33, 0.0  ;;  %vm688_vm3 = vcmp.gt.f32.partialorder %v684_v60, 0.0 }
  0xe0   : > { %vm689_vm0 = vcmp.gt.f32.partialorder %v685_v19, 0.0  ;;  %vm690_vm4 = vcmp.gt.f32.partialorder %v686_v24, 0.0  ;;  %vm691_vm12 = vmor %vm623_vm13, %vm687_vm15 }
  0xe1   : > { %vm692_vm2 = vmor %vm624_vm10, %vm688_vm3  ;;  %v922_v26 = vsel %vm691_vm12, 1.0, %v1187_v39 }
  0xe2   : > { %vm693_vm5 = vmor %vm625_vm11, %vm689_vm0  ;;  %v923_v61 = vsel %vm692_vm2, 1.0, %v1187_v39 }
  0xe3   : > { %vm694_vm1 = vmor %vm626_vm14, %vm690_vm4  ;;  %v924_v58 = vsel %vm693_vm5, 1.0, %v1187_v39  ;;  %v703_v54 = vadd.f32 %v923_v61, %v922_v26 }
  0xe4   : > { %v925_v57 = vsel %vm694_vm1, 1.0, %v1187_v39 }
  0xe5   : > { %v704_v35 = vadd.f32 %v924_v58, %v703_v54  ;;  %v706_v16 = vsel %vm705_vm6, %v925_v57, 0.0 }
  0xe7   : > { %v707_v0 = vadd.f32 %v706_v16, %v704_v35 }
  0xe9   : > { %v708_v11 = vrot.slane %v707_v0, 4 }
  0xeb   : > { %v709_v21 = vadd.f32 %v708_v11, %v707_v0 }
  0xed   : > { %v710_v17 = vrot.slane %v709_v21, 2 }
  0xef   : > { %v711_v22 = vadd.f32 %v710_v17, %v709_v21 }
  0xf1   : > { %v712_v14 = vrot.slane %v711_v22, 1 }
  0xf3   : > { %v713_v10 = vadd.f32 %v712_v14, %v711_v22 }
  0xf5   : > { %v714_v27 = vmul.f32 0.04, %v713_v10 }
  0xf7   : > { %v715_v34 = vmax.f32 %v714_v27, 0.0 }
  0xf9   : > { %v716_v51 = vmin.f32 %v715_v34, 1.0 }
  0xfb   : > { %v722_v2 = vsub.f32 0.0, %v716_v51 }
  0xfd   : > { %v723_v62 = vmul.f32 %v722_v2, %v721_v1 }
  0xff   : > { %v724_v3 = vsel %vm720_vm7, %v723_v62, 0.0 }
 0x100   : > { %v728_v4 = vrot.slane %v724_v3, %v1495_v29 }
 0x102   : > { %v729_v5 = vadd.f32 %v728_v4, %v717_v63 }
 0x104   : > { %v730_v7 = vmax.f32 %v729_v5, 0.0 }
 0x106   : > { %v731_v59 = vmin.f32 %v730_v7, 1.0 }
 0x108   : > { %732 = vst [vmem:[%s337_s6] sm:$0x7] %v731_v59 }
 0x109   : > { %1115 = shalt.err (!%p1112_p13)
}
 0x10a   : > { %s1116_s29 = scalar_lea.hbm %s745_s16, 64  ;;  %s1120_s7 = scalar_lea.hbm %s1899_s5, 128 }
 0x10b   : > { %p1117_p2 = scmp.ne.s32.totalorder %s745_s16, %s1116_s29  ;;  %p1121_p6 = scmp.lt.s32.totalorder %s745_s16, %s1899_s5 }
 0x10c   : > { %p1122_p12 = scmp.lt.s32.totalorder %s1120_s7, %s1116_s29 }
 0x10d   : > { %p1118_p7 = pnand %p1117_p2, %p1992_p1 }
 0x10e   : > { %p1123_p3 = por %p1122_p12, %p1121_p6 }
 0x10f   : > { %p1119_p8 = pneg %p1118_p7 }
 0x111   : > { %p1124_p4 = pnand %p1123_p3, %p1119_p8 }
 0x113   : > { %1127 = shalt.err (!%p1124_p4)
}
 0x114   : > { %942 = dma.vmem_to_hbm [thread:$0]  (%p1992_p1), %s748_s27, 64, %s745_s16, %s734_s30  }
 0x115 PF: > { %s1993_s25 = sld [smem:[#allocation16_spill]]  ;;  %p1996_p0 = scmp.ge.s32.totalorder %s1178_s21, 2 }
 0x116   : > { %s1994_s0 = sld [smem:[#allocation20_spill]] }
 0x11b   : > { %s759_s12 = sand.u32 1, %s1993_s25  }
 0x11c   : > { %p1995_p5 = scmp.ne.s32.totalorder %s1994_s0, 0  ;;  %s760_s14 = scalar_lea.sflag [#allocation4], %s759_s12 }
 0x11e   : > { %p959_p9 = pnand %p1996_p0, %p1995_p5 }
 0x120   : > { %p960_p10 = pneg %p959_p9 }
 0x122   : > { %1161 = dma.done.wait (%p960_p10), %s760_s14, 64  }
 0x123   : > { %1163 = vsyncadd (%p960_p10), %s760_s14, 4294967232  ;;  %s1997_s21 = sld [smem:[#allocation18_spill]]  ;;  %s2000_s18 = smov %s1170_s19 }
 0x124   : > { %s1998_s11 = sld [smem:[#allocation17_spill]] }
 0x125   : > { %s1999_s20 = sld [smem:[#allocation19_spill]] }
 0x129   : > { %p22_p11 = scmp.ge.s32.totalorder %s1997_s21, 4  }
 0x12a   : > { %s2001_s19 = smov %s1998_s11 }
 0x12b   :  { %24 = sbr.rel (!%p22_p11) target bundleno = 12 (0xc), region = 119 }
 0x130   :  { %765 = vsyncpa [#allocation3], 1 }
 0x131   :  { %767 = vsyncpa [#allocation3 + $0x1], 1 }
 0x132   :  { %768 = vsyncpa [#allocation7], 1 }
 0x133   :  { %770 = vsyncpa [#allocation7 + $0x1], 1 }
 0x134   :  { %771 = vsyncpa [#allocation4], 1 }
 0x135   :  { %773 = vsyncpa [#allocation4 + $0x1], 1 }
 0x136   :  { %774 = vsyncpa [#allocation5], 1 }
 0x137   :  { %776 = vsyncpa [#allocation5 + $0x1], 1 }

</bundles_post_ra>
